<compile_context>
chip_gen: v7x
topology: tpu7x:2x2x1
jax: 0.10.0
libtpu: 0.0.40
codegen_flags: <defaults>
</compile_context>

<pallas_src>
import jax
import jax.numpy as jnp
from jax.experimental import pallas as pl
from jax.experimental.pallas import tpu as pltpu

F_IN = 128
F_OUT = 128
TM_MAX = 4096  # fits v5e 16 MiB scoped VMEM; well under v6e/v7x 32 MiB scoped default


def linear_add_kernel(x_ref, wt_ref, b_ref, other_ref, o_ref):
    # x_ref:     (TM, F_IN)
    # wt_ref:    (F_IN, F_OUT)   pre-transposed weight -> MXU-native contraction
    # b_ref:     (1, F_OUT)
    # other_ref: (TM, F_OUT)
    # o_ref:     (TM, F_OUT)
    y = jnp.dot(x_ref[...], wt_ref[...], preferred_element_type=jnp.float32)
    o_ref[...] = (y + b_ref[...] + other_ref[...]).astype(o_ref.dtype)


def _round_up(n, m):
    return ((n + m - 1) // m) * m


def linear_add(x, weight, bias, other):
    """y = x @ weight.T + bias + other  (PyTorch Linear + in-place residual add).

    weight is PyTorch-layout [F_OUT, F_IN]; it is transposed once here (64 KiB, one-time)
    so the kernel's matmul runs in the MXU-native orientation.
    """
    B = x.shape[0]
    # Largest tile <= TM_MAX, multiple of 8; cdiv grid handles any B (last block masked).
    tm = min(TM_MAX, _round_up(B, 8))
    grid_b = pl.cdiv(B, tm)

    wt = weight.T                  # [F_IN, F_OUT], one-time transpose outside the kernel
    b2 = bias.reshape(1, F_OUT)    # cheap 2-D view for TPU layout

    return pl.pallas_call(
        linear_add_kernel,
        out_shape=jax.ShapeDtypeStruct((B, F_OUT), x.dtype),
        grid_spec=pltpu.PrefetchScalarGridSpec(
            num_scalar_prefetch=0,
            grid=(grid_b,),
            in_specs=[
                pl.BlockSpec((tm, F_IN), lambda i: (i, 0)),      # x: streamed over batch
                pl.BlockSpec((F_IN, F_OUT), lambda i: (0, 0)),   # W.T: VMEM-resident
                pl.BlockSpec((1, F_OUT), lambda i: (0, 0)),      # b: VMEM-resident
                pl.BlockSpec((tm, F_OUT), lambda i: (i, 0)),     # other: streamed over batch
            ],
            out_specs=pl.BlockSpec((tm, F_OUT), lambda i: (i, 0)),
        ),
        # Batch axis is fully parallel -> sharded across TensorCores (v7x megacore).
        compiler_params=pltpu.CompilerParams(
            dimension_semantics=("parallel",)),
        # `other` buffer may be reused for the output (PyTorch `x += other` semantics);
        # only actually honored when the caller donates `other` at a jit boundary.
        input_output_aliases={3: 0},
    )(x, wt, b2, other)


if __name__ == "__main__":
    key = jax.random.PRNGKey(0)
    k_x, k_w, k_b, k_o = jax.random.split(key, 4)

    B = 8  # small batch for the smoke test
    x = jax.random.normal(k_x, (B, F_IN), dtype=jnp.float32)
    # PyTorch Linear shapes: W [128, 128], b [128]
    weight = jax.random.normal(k_w, (F_OUT, F_IN), dtype=jnp.float32) * 0.05
    bias = jax.random.normal(k_b, (F_OUT,), dtype=jnp.float32) * 0.05
    # `other` is an external tensor in the original program; model it as a same-shape input.
    other = jax.random.normal(k_o, (B, F_OUT), dtype=jnp.float32)

    # Reference computed before the kernel call (the kernel may alias `other`'s buffer).
    ref = x @ weight.T + bias + other

    out = linear_add(x, weight, bias, other)
    jax.block_until_ready(out)

    assert jnp.allclose(out, ref, atol=1e-5, rtol=1e-5)

    print("KERNEL_OK")
</pallas_src>

<mosaic_0001>
module attributes {stable_mosaic.version = 11 : i64} {
  func.func @linear_add_kernel(%arg0: i32, %arg1: memref<8x128xf32, #tpu.memory_space<vmem>>, %arg2: memref<128x128xf32, #tpu.memory_space<vmem>>, %arg3: memref<1x128xf32, #tpu.memory_space<vmem>>, %arg4: memref<8x128xf32, #tpu.memory_space<vmem>>, %arg5: memref<8x128xf32, #tpu.memory_space<vmem>>) attributes {dimension_semantics = [#tpu.dimension_semantics<parallel>], iteration_bounds = array<i64: 1>, scalar_prefetch = 0 : i64, scratch_operands = 0 : i64, tpu.core_type = #tpu.core_type<tc>, window_params = [{transform_indices = @transform_0, window_bounds = array<i64: 8, 128>}, {pipeline_mode = #tpu.pipeline_mode<synchronous>, transform_indices = @transform_1, window_bounds = array<i64: 128, 128>}, {pipeline_mode = #tpu.pipeline_mode<synchronous>, transform_indices = @transform_2, window_bounds = array<i64: 1, 128>}, {transform_indices = @transform_3, window_bounds = array<i64: 8, 128>}, {transform_indices = @transform_4, window_bounds = array<i64: 8, 128>}]} {
    %c0 = arith.constant 0 : index
    %c0_0 = arith.constant 0 : index
    %0 = vector.load %arg1[%c0, %c0_0] : memref<8x128xf32, #tpu.memory_space<vmem>>, vector<8x128xf32>
    %c0_1 = arith.constant 0 : index
    %c0_2 = arith.constant 0 : index
    %1 = vector.load %arg2[%c0_1, %c0_2] : memref<128x128xf32, #tpu.memory_space<vmem>>, vector<128x128xf32>
    %cst = arith.constant dense<0.000000e+00> : vector<8x128xf32>
    %2 = tpu.matmul %0, %1, %cst {dimension_numbers = #tpu.dot_dimension_numbers<[1], [0], [0], [1], [0, 0, 1, 1], [], []>} : vector<8x128xf32>, vector<128x128xf32>, vector<8x128xf32> -> vector<8x128xf32>
    %c0_3 = arith.constant 0 : index
    %c0_4 = arith.constant 0 : index
    %3 = vector.load %arg3[%c0_3, %c0_4] : memref<1x128xf32, #tpu.memory_space<vmem>>, vector<1x128xf32>
    %4 = vector.broadcast %3 : vector<1x128xf32> to vector<8x128xf32>
    %5 = arith.addf %2, %4 : vector<8x128xf32>
    %c0_5 = arith.constant 0 : index
    %c0_6 = arith.constant 0 : index
    %6 = vector.load %arg4[%c0_5, %c0_6] : memref<8x128xf32, #tpu.memory_space<vmem>>, vector<8x128xf32>
    %7 = arith.addf %5, %6 : vector<8x128xf32>
    %c0_7 = arith.constant 0 : index
    %c0_8 = arith.constant 0 : index
    %8 = vector.load %arg5[%c0_7, %c0_8] : memref<8x128xf32, #tpu.memory_space<vmem>>, vector<8x128xf32>
    tpu.vector_store %arg5[%c0_7, %c0_8], %7 {strides = array<i32>} : memref<8x128xf32, #tpu.memory_space<vmem>>, vector<8x128xf32>,
    return
  }
  func.func @transform_0(%arg0: i32) -> (i32, i32) {
    %c0_i32 = arith.constant 0 : i32
    %c0_i32_0 = arith.constant 0 : i32
    return %arg0, %c0_i32 : i32, i32
  }
  func.func @transform_1(%arg0: i32) -> (i32, i32) {
    %c0_i32 = arith.constant 0 : i32
    %c0_i32_0 = arith.constant 0 : i32
    %c0_i32_1 = arith.constant 0 : i32
    return %c0_i32, %c0_i32_0 : i32, i32
  }
  func.func @transform_2(%arg0: i32) -> (i32, i32) {
    %c0_i32 = arith.constant 0 : i32
    %c0_i32_0 = arith.constant 0 : i32
    %c0_i32_1 = arith.constant 0 : i32
    return %c0_i32, %c0_i32_0 : i32, i32
  }
  func.func @transform_3(%arg0: i32) -> (i32, i32) {
    %c0_i32 = arith.constant 0 : i32
    %c0_i32_0 = arith.constant 0 : i32
    return %arg0, %c0_i32 : i32, i32
  }
  func.func @transform_4(%arg0: i32) -> (i32, i32) {
    %c0_i32 = arith.constant 0 : i32
    %c0_i32_0 = arith.constant 0 : i32
    return %arg0, %c0_i32 : i32, i32
  }
}

</mosaic_0001>

<bundles_post_ra>
// kernel: tpu_custom_call.1
= control target key start
LH: loop header
LB: loop body
LE: loop exit
PB: predicated region body
PF: predicated region fallthrough
CT: control target
= control target key end

     0   :  { %9 = vsyncpa [#allocation3], 0  ;;  %s389_s0 = inlined_call_operand.vmem [shape: f32[8,128], index: 0, kind: input, shape index: {}]   ;;  %s390_s1 = inlined_call_operand.hbm [shape: f32[128,128], index: 1, kind: input, shape index: {}]   ;;  %s391_s2 = inlined_call_operand.vmem [shape: f32[1,128], index: 2, kind: input, shape index: {}]   ;;  %s392_s3 = inlined_call_operand.hbm [shape: f32[8,128], index: 3, kind: input, shape index: {}, may-alias: {3,4}]   ;;  %s393_s4 = inlined_call_operand.hbm [shape: f32[8,128], index: 4, kind: output, shape index: {}, may-alias: {3,4}]  }
   0x1   :  { %10 = vsyncpa [#allocation6], 0 }
   0x2   :  { %11 = vsyncpa [#allocation4], 0  ;;  %s314_s15 = smov [#allocation2]   ;;  %s242_s19 = scalar_lea.hbm %s390_s1, 2048 }
   0x3   :  { %s19_s16 = sshll.u32 %s314_s15, 4  ;;  %p243_p0 = scmp.ne.s32.totalorder %s390_s1, %s242_s19  ;;  %s20_s16 = int_to_ptr.vmem [resolvable:$true] %s19_s16 }
   0x4   :  { %p246_p1 = scmp.lt.u32.totalorder %s242_s19, %s390_s1 }
   0x6   :  { %p248_p2 = pnand %p246_p1, %p243_p0 }
   0x8   :  { %251 = shalt.err (!%p248_p2)
}
   0x9   :  { %s252_s24 = scalar_lea.vmem %s20_s16, 2048  ;;  %p257_p4 = scmp.lt.s32.totalorder %s20_s16, %s20_s16 }
   0xa   :  { %p253_p3 = scmp.ne.s32.totalorder %s20_s16, %s252_s24  ;;  %p258_p5 = scmp.lt.s32.totalorder %s252_s24, %s252_s24 }
   0xc   :  { %p259_p6 = por %p258_p5, %p257_p4 }
   0xe   :  { %p260_p7 = pnand %p259_p6, %p253_p3 }
  0x10   :  { %263 = shalt.err (!%p260_p7)
}
  0x11   :  { %s315_s25 = smov 128   ;;  %s316_s26 = smov 8  }
  0x12   :  { %25 = dma.hbm_to_vmem [thread:$0]  %s390_s1, 2048, %s20_s16, [#allocation3], %s315_s25, %s315_s25, %s316_s26  }
  0x13   :  { %s317_s29 = smov [#allocation5]   ;;  %s264_s7 = scalar_lea.hbm %s392_s3, 128 }
  0x14   :  { %s34_s30 = sshll.u32 %s317_s29, 4  ;;  %p265_p8 = scmp.ne.s32.totalorder %s392_s3, %s264_s7  ;;  %s35_s30 = int_to_ptr.vmem [resolvable:$true] %s34_s30 }
  0x15   :  { %p268_p9 = scmp.lt.u32.totalorder %s264_s7, %s392_s3 }
  0x17   :  { %p270_p10 = pnand %p268_p9, %p265_p8 }
  0x19   :  { %273 = shalt.err (!%p270_p10)
}
  0x1a   :  { %s274_s12 = scalar_lea.vmem %s35_s30, 128  ;;  %p279_p12 = scmp.lt.s32.totalorder %s35_s30, %s35_s30 }
  0x1b   :  { %p275_p11 = scmp.ne.s32.totalorder %s35_s30, %s274_s12  ;;  %p280_p13 = scmp.lt.s32.totalorder %s274_s12, %s274_s12 }
  0x1d   :  { %p281_p0 = por %p280_p13, %p279_p12 }
  0x1f   :  { %p282_p1 = pnand %p281_p0, %p275_p11 }
  0x21   :  { %285 = shalt.err (!%p282_p1)
}
  0x22   :  { %37 = dma.hbm_to_vmem [thread:$0]  %s392_s3, 128, %s35_s30, [#allocation6]  }
  0x23   :  { %308 = dma.done.wait [#allocation3], 2048  }
  0x24   :  { %309 = vsyncadd [#allocation3], 4294965248 }
  0x25   :  { %310 = dma.done.wait [#allocation6], 128  }
  0x26   :  { %311 = vsyncadd [#allocation6], 4294967168  ;;  %v318_v0 = vmov 0.0|0.0   ;;  %vm319_vm0 = vmmov 0   ;;  %v320_v1 = vmov 0.0   ;;  %v45_v2 = vld [vmem:[#allocation2] sm:$0xff] }
  0x27   :  { %210 = vmatprep.subr.bf16.mxu0 %v318_v0  ;;  %207 = vmatprep.mubr.msk.f32.mxu0 %vm319_vm0, %v320_v1  ;;  %v46_v3 = vld [vmem:[#allocation2 + $0x8] sm:$0xff]  ;;  %v47_v4 = vld [vmem:[#allocation2 + $0x10] sm:$0xff]  ;;  %v48_v6 = vld [vmem:[#allocation2 + $0x18] sm:$0xff]  ;;  %s321_s17 = smov [#allocation7]  }
  0x28   :  { %v211_v5 = vpack.c.bf16 %v46_v3, %v45_v2  ;;  %v214_v7 = vpack.c.bf16 %v48_v6, %v47_v4  ;;  %v49_v8 = vld [vmem:[#allocation2 + $0x20] sm:$0xff]  ;;  %v50_v9 = vld [vmem:[#allocation2 + $0x28] sm:$0xff]  ;;  %v51_v11 = vld [vmem:[#allocation2 + $0x30] sm:$0xff]  ;;  %s147_s18 = sshll.u32 %s321_s17, 4  ;;  %s148_s18 = int_to_ptr.vmem [resolvable:$true] %s147_s18 }
  0x29   :  { %v217_v10 = vpack.c.bf16 %v50_v9, %v49_v8  ;;  %v52_v12 = vld [vmem:[#allocation2 + $0x38] sm:$0xff]  ;;  %v53_v14 = vld [vmem:[#allocation2 + $0x40] sm:$0xff]  ;;  %v54_v15 = vld [vmem:[#allocation2 + $0x48] sm:$0xff]  ;;  %s286_s19 = scalar_lea.vmem %s148_s18, 128  ;;  %p291_p3 = scmp.lt.s32.totalorder %s148_s18, %s148_s18 }
  0x2a   :  { %212 = vmatpush3.bf16.msra.mxu0 %v211_v5  ;;  %v220_v13 = vpack.c.bf16 %v52_v12, %v51_v11  ;;  %v223_v16 = vpack.c.bf16 %v54_v15, %v53_v14  ;;  %v55_v17 = vld [vmem:[#allocation2 + $0x50] sm:$0xff]  ;;  %v56_v18 = vld [vmem:[#allocation2 + $0x58] sm:$0xff]  ;;  %v57_v20 = vld [vmem:[#allocation2 + $0x60] sm:$0xff]  ;;  %p287_p2 = scmp.ne.s32.totalorder %s148_s18, %s286_s19  ;;  %p292_p4 = scmp.lt.s32.totalorder %s286_s19, %s286_s19 }
  0x2b   :  { %213 = vmatprep.subr.bf16.mxu0 %v318_v0  ;;  %v226_v19 = vpack.c.bf16 %v56_v18, %v55_v17  ;;  %v58_v21 = vld [vmem:[#allocation2 + $0x68] sm:$0xff]  ;;  %v59_v23 = vld [vmem:[#allocation2 + $0x70] sm:$0xff]  ;;  %v60_v24 = vld [vmem:[#allocation2 + $0x78] sm:$0xff] }
  0x2c   :  { %v229_v22 = vpack.c.bf16 %v58_v21, %v57_v20  ;;  %v232_v25 = vpack.c.bf16 %v60_v24, %v59_v23  ;;  %v44_v26 = vld [vmem:[%s389_s0] sm:$0xff]  ;;  %v138_v29 = vld [vmem:[#allocation5] sm:$0xff]  ;;  %p293_p5 = por %p292_p4, %p291_p3 }
  0x2d   :  { %v157_v27 = vld [vmem:[%s391_s2] ss:$0 sm:$0xff] }
  0x2e   :  { %215 = vmatpush3.bf16.msra.mxu0 %v214_v7  ;;  %p294_p6 = pnand %p293_p5, %p287_p2 }
  0x2f   :  { %216 = vmatprep.subr.bf16.mxu0 %v318_v0 }
  0x32   :  { %218 = vmatpush3.bf16.msra.mxu0 %v217_v10 }
  0x33   :  { %219 = vmatprep.subr.bf16.mxu0 %v318_v0 }
  0x36   :  { %221 = vmatpush3.bf16.msra.mxu0 %v220_v13 }
  0x37   :  { %222 = vmatprep.subr.bf16.mxu0 %v318_v0 }
  0x3a   :  { %224 = vmatpush3.bf16.msra.mxu0 %v223_v16 }
  0x3b   :  { %225 = vmatprep.subr.bf16.mxu0 %v318_v0 }
  0x3e   :  { %227 = vmatpush3.bf16.msra.mxu0 %v226_v19 }
  0x3f   :  { %228 = vmatprep.subr.bf16.mxu0 %v318_v0 }
  0x42   :  { %230 = vmatpush3.bf16.msra.mxu0 %v229_v22 }
  0x43   :  { %231 = vmatprep.subr.bf16.mxu0 %v318_v0 }
  0x46   :  { %233 = vmatpush3.bf16.msra.mxu0 %v232_v25 }
  0x49   :  { %208 = vmatmul.mubr.f32.vlgmr.msra.gmra.mrb[0].mxu0 %v44_v26 }
 0x11c   :  { %v134_v28 = vpop.f32.mrb[0].mxu0 }
 0x11d   :  { %v135_v30 = vadd.f32 %v157_v27, %v134_v28  ;;  %v209_v31 = vpop.f32.mrb[1].mxu0 }
 0x11f   :  { %v139_v32 = vadd.f32 %v138_v29, %v135_v30 }
 0x121   :  { %140 = vst [vmem:[#allocation7] sm:$0xff] %v139_v32 }
 0x122   :  { %297 = shalt.err (!%p294_p6)
}
 0x123   :  { %s298_s2 = scalar_lea.hbm %s393_s4, 128 }
 0x124   :  { %p299_p7 = scmp.ne.s32.totalorder %s393_s4, %s298_s2  ;;  %p302_p8 = scmp.lt.u32.totalorder %s298_s2, %s393_s4 }
 0x126   :  { %p304_p9 = pnand %p302_p8, %p299_p7 }
 0x128   :  { %307 = shalt.err (!%p304_p9)
}
 0x129   :  { %150 = dma.vmem_to_hbm [thread:$0]  %s148_s18, 128, %s393_s4, [#allocation4]  }
 0x12a   :  { %312 = dma.done.wait [#allocation4], 128  }
 0x12b   :  { %313 = vsyncadd [#allocation4], 4294967168 }
 0x12c   :  { %154 = vsyncpa [#allocation3], 1 }
 0x12d   :  { %155 = vsyncpa [#allocation6], 1 }
 0x12e   :  { %156 = vsyncpa [#allocation4], 1 }

</bundles_post_ra>
